<compile_context>
chip_gen: v5e
topology: v5e:2x2
jax: 0.10.0
libtpu: 0.0.40
codegen_flags: <defaults>
</compile_context>

<pallas_src>
import jax
import jax.numpy as jnp
import numpy as np
from jax.experimental import pallas as pl
from jax.experimental.pallas import tpu as pltpu


_VMEM = pl.BlockSpec(memory_space=pltpu.MemorySpace.VMEM)
_F32 = jnp.float32
_DEC_HID = 32     # hidden width of each local-decoder head (fixed by module)
_POS_ENC = 12
_ATT_ENC = 4


def _round_up(x, m):
    return ((x + m - 1) // m) * m


# ----------------------------------------------------------------------------
# Parameter init (deterministic, PyTorch-like uniform(-1/sqrt(fan_in), ...))
# Weights are stored transposed vs. PyTorch: (in_features, out_features).
# ----------------------------------------------------------------------------
def _init_linear(key, fan_in, fan_out):
    kw, kb = jax.random.split(key)
    s = 1.0 / np.sqrt(fan_in)
    w = jax.random.uniform(kw, (fan_in, fan_out), _F32, -s, s)
    b = jax.random.uniform(kb, (1, fan_out), _F32, -s, s)
    return w, b


def _init_gru_layer(key, in_dim, hidden_dim):
    k1, k2, k3, k4 = jax.random.split(key, 4)
    s = 1.0 / np.sqrt(hidden_dim)
    return dict(
        wih=jax.random.uniform(k1, (in_dim, 3 * hidden_dim), _F32, -s, s),
        whh=jax.random.uniform(k2, (hidden_dim, 3 * hidden_dim), _F32, -s, s),
        bih=jax.random.uniform(k3, (1, 3 * hidden_dim), _F32, -s, s),
        bhh=jax.random.uniform(k4, (1, 3 * hidden_dim), _F32, -s, s),
    )


def init_params(key, image_dim, hidden_dim, num_classes):
    keys = jax.random.split(key, 16)
    p = {}
    p["ie_w1"], p["ie_b1"] = _init_linear(keys[0], image_dim, 128)
    p["ie_w2"], p["ie_b2"] = _init_linear(keys[1], 128, 32)
    p["ie_w3"], p["ie_b3"] = _init_linear(keys[2], 32, 8)
    p["l_gru0"] = _init_gru_layer(keys[3], 8 + _POS_ENC + _ATT_ENC, hidden_dim)
    p["l_gru1"] = _init_gru_layer(keys[4], hidden_dim, hidden_dim)
    p["g_gru0"] = _init_gru_layer(keys[5], hidden_dim, hidden_dim)
    p["g_gru1"] = _init_gru_layer(keys[6], hidden_dim, hidden_dim)
    p["ldd_w1"], p["ldd_b1"] = _init_linear(keys[7], hidden_dim + _ATT_ENC, _DEC_HID)
    p["ldd_w2"], p["ldd_b2"] = _init_linear(keys[8], _DEC_HID, 1)
    p["lcd_w1"], p["lcd_b1"] = _init_linear(keys[9], hidden_dim + _ATT_ENC, _DEC_HID)
    p["lcd_w2"], p["lcd_b2"] = _init_linear(keys[10], _DEC_HID, num_classes)
    p["gd_w1"], p["gd_b1"] = _init_linear(keys[11], hidden_dim + _POS_ENC, _DEC_HID)
    p["gd_w2"], p["gd_b2"] = _init_linear(keys[12], _DEC_HID, 1)
    return p


# ----------------------------------------------------------------------------
# Kernel factory (closed over the static slab layout -> static zero-cost views)
# ----------------------------------------------------------------------------
def _make_kernels(layout):
    H = layout["H"]
    lanes = layout["lanes"]
    w_off = layout["w_off"]
    b_off = layout["b_off"]

    def W(w_ref, name):
        o, r, c = w_off[name]
        return w_ref[o:o + r, :c]          # static slice of the weight slab

    def Bv(b_ref, name):
        i, c = b_off[name]
        return b_ref[i:i + 1, :c]          # static slice of the bias slab

    def gru(xh, h, w, b):
        # One fused matmul per cell. Column layout of w / b:
        #   [r(ih+hh) | z(ih+hh) | n_ih | n_hh]
        g = jnp.dot(xh, w, preferred_element_type=_F32) + b     # (B, 4H)
        r = jax.nn.sigmoid(g[:, :H])
        z = jax.nn.sigmoid(g[:, H:2 * H])
        n = jnp.tanh(g[:, 2 * H:3 * H] + r * g[:, 3 * H:4 * H])
        return n + z * (h - n)             # == (1 - z) * n + z * h

    def encoder_body(image_ref, pos_ref, h_ref, w_ref, b_ref):
        # image encoder: Linear->ReLU->Linear->ReLU->Linear
        x = jnp.maximum(jnp.dot(image_ref[...], W(w_ref, "ie_w1"),
                                preferred_element_type=_F32) + Bv(b_ref, "ie_b1"), 0.0)
        x = jnp.maximum(jnp.dot(x, W(w_ref, "ie_w2"),
                                preferred_element_type=_F32) + Bv(b_ref, "ie_b2"), 0.0)
        img_feat = (jnp.dot(x, W(w_ref, "ie_w3"),
                            preferred_element_type=_F32) + Bv(b_ref, "ie_b3"))  # (B, 8)
        pos = pos_ref[...]                                                       # (B, 16)

        h_l0p = h_ref[0, 0, :, :]
        h_l1p = h_ref[0, 1, :, :]
        h_g0p = h_ref[1, 0, :, :]
        h_g1p = h_ref[1, 1, :, :]

        # local / global 2-layer GRUs, one fused matmul per cell
        h_l0 = gru(jnp.concatenate([img_feat, pos, h_l0p], axis=1), h_l0p,
                   W(w_ref, "gru_l0"), Bv(b_ref, "gru_l0"))
        h_l1 = gru(jnp.concatenate([h_l0, h_l1p], axis=1), h_l1p,
                   W(w_ref, "gru_l1"), Bv(b_ref, "gru_l1"))
        h_g0 = gru(jnp.concatenate([h_l1, h_g0p], axis=1), h_g0p,
                   W(w_ref, "gru_g0"), Bv(b_ref, "gru_g0"))
        h_g1 = gru(jnp.concatenate([h_g0, h_g1p], axis=1), h_g1p,
                   W(w_ref, "gru_g1"), Bv(b_ref, "gru_g1"))
        return h_l0, h_l1, h_g0, h_g1

    def encoder_kernel(image_ref, pos_ref, h_ref, w_ref, b_ref, feat_ref):
        """Non-pretrain path: feature = [local_feature | global_feature]."""
        _, h_l1, _, h_g1 = encoder_body(image_ref, pos_ref, h_ref, w_ref, b_ref)
        feat_ref[:, :H] = h_l1
        feat_ref[:, H:] = h_g1

    def pretrain_kernel(image_ref, pos_ref, h_ref, lq_ref, gq_ref, w_ref, b_ref,
                        newh_ref, loc_ref, exp_ref):
        """Pretrain path: encoder + GRUs + all three decoders fused."""
        h_l0, h_l1, h_g0, h_g1 = encoder_body(image_ref, pos_ref, h_ref, w_ref, b_ref)
        newh_ref[0, 0, :, :] = h_l0
        newh_ref[0, 1, :, :] = h_l1
        newh_ref[1, 0, :, :] = h_g0
        newh_ref[1, 1, :, :] = h_g1

        B = h_l1.shape[0]
        BQ = lq_ref.shape[0]
        Q = BQ // B

        # ---- local decoders: dist+cls share a fused, lane-padded first layer ----
        hf = (jnp.dot(h_l1, W(w_ref, "loc_wh"), preferred_element_type=_F32)
              + Bv(b_ref, "loc_b1"))                                  # (B, 128)
        hq = jnp.dot(lq_ref[...], W(w_ref, "loc_wq"),
                     preferred_element_type=_F32)                     # (BQ, 128)
        # broadcast local_feature over the Q queries (sublane broadcast; Q is a
        # multiple of 8 so the reshapes are tile-aligned and free)
        h_loc = jnp.maximum(hq.reshape(B, Q, lanes) + hf[:, None, :], 0.0)
        h_loc = h_loc.reshape(BQ, lanes)
        out = (jnp.dot(h_loc, W(w_ref, "loc_w2"), preferred_element_type=_F32)
               + Bv(b_ref, "loc_b2"))                                 # (BQ, 1 + C)
        lane_idx = jax.lax.broadcasted_iota(jnp.int32, out.shape, 1)
        # distance head (column 0) has a trailing ReLU, class head does not
        loc_ref[...] = jnp.where(lane_idx == 0, jnp.maximum(out, 0.0), out)

        # ---- global exploration-rate decoder ----
        xg = jnp.concatenate([h_g1, gq_ref[...]], axis=1)             # (B, H + 12)
        hg = jnp.maximum(jnp.dot(xg, W(w_ref, "glb_w1"),
                                 preferred_element_type=_F32) + Bv(b_ref, "glb_b1"), 0.0)
        exp_ref[...] = jax.nn.sigmoid(
            jnp.dot(hg, W(w_ref, "glb_w2"), preferred_element_type=_F32)
            + Bv(b_ref, "glb_b2"))

    return encoder_kernel, pretrain_kernel


# ----------------------------------------------------------------------------
# One-time host-side weight packing into two lane-dense slabs
# ----------------------------------------------------------------------------
def _fuse_gru_cell(g, in_dim, H):
    """Build the (in+H, 4H) fused cell matrix and its (1, 4H) bias row."""
    wih, whh, bih, bhh = g["wih"], g["whh"], g["bih"], g["bhh"]
    top = jnp.concatenate([wih[:, :H], wih[:, H:2 * H], wih[:, 2 * H:],
                           jnp.zeros((in_dim, H), _F32)], axis=1)
    bot = jnp.concatenate([whh[:, :H], whh[:, H:2 * H],
                           jnp.zeros((H, H), _F32), whh[:, 2 * H:]], axis=1)
    w = jnp.concatenate([top, bot], axis=0)                           # (in+H, 4H)
    b = jnp.concatenate([bih[:, :H] + bhh[:, :H],
                         bih[:, H:2 * H] + bhh[:, H:2 * H],
                         bih[:, 2 * H:], bhh[:, 2 * H:]], axis=1)     # (1, 4H)
    return w, b


def preprocess_params(p):
    H = p["l_gru0"]["whh"].shape[0]
    C = p["lcd_w2"].shape[1]
    in0 = 8 + _POS_ENC + _ATT_ENC

    w_l0, b_l0 = _fuse_gru_cell(p["l_gru0"], in0, H)
    w_l1, b_l1 = _fuse_gru_cell(p["l_gru1"], H, H)
    w_g0, b_g0 = _fuse_gru_cell(p["g_gru0"], H, H)
    w_g1, b_g1 = _fuse_gru_cell(p["g_gru1"], H, H)

    lanes = _round_up(max(128, 4 * H), 128)

    # local decoder: dist/cls first layers fused side by side, padded to `lanes`
    loc1 = jnp.concatenate([p["ldd_w1"], p["lcd_w1"]], axis=1)        # (H+4, 64)
    loc_wh = jnp.zeros((H, lanes), _F32).at[:, :2 * _DEC_HID].set(loc1[:H])
    loc_wq = jnp.zeros((_ATT_ENC, lanes), _F32).at[:, :2 * _DEC_HID].set(loc1[H:])
    loc_b1 = jnp.zeros((1, lanes), _F32).at[:, :2 * _DEC_HID].set(
        jnp.concatenate([p["ldd_b1"], p["lcd_b1"]], axis=1))
    # fused, zero-padded second layer: rows match the lane-padded hidden,
    # column 0 = distance head, columns 1.. = class head
    loc_w2 = jnp.zeros((lanes, 1 + C), _F32)
    loc_w2 = loc_w2.at[:_DEC_HID, 0:1].set(p["ldd_w2"])
    loc_w2 = loc_w2.at[_DEC_HID:2 * _DEC_HID, 1:].set(p["lcd_w2"])
    loc_b2 = jnp.concatenate([p["ldd_b2"], p["lcd_b2"]], axis=1)      # (1, 1+C)

    weight_blocks = [
        ("ie_w1", p["ie_w1"]), ("ie_w2", p["ie_w2"]), ("ie_w3", p["ie_w3"]),
        ("gru_l0", w_l0), ("gru_l1", w_l1), ("gru_g0", w_g0), ("gru_g1", w_g1),
        ("loc_wh", loc_wh), ("loc_wq", loc_wq), ("loc_w2", loc_w2),
        ("glb_w1", p["gd_w1"]), ("glb_w2", p["gd_w2"]),
    ]
    bias_rows = [
        ("ie_b1", p["ie_b1"]), ("ie_b2", p["ie_b2"]), ("ie_b3", p["ie_b3"]),
        ("gru_l0", b_l0), ("gru_l1", b_l1), ("gru_g0", b_g0), ("gru_g1", b_g1),
        ("loc_b1", loc_b1), ("loc_b2", loc_b2),
        ("glb_b1", p["gd_b1"]), ("glb_b2", p["gd_b2"]),
    ]

    w_off, parts, row = {}, [], 0
    for name, w in weight_blocks:
        r, c = int(w.shape[0]), int(w.shape[1])
        rp = _round_up(r, 8)                       # sublane-aligned block starts
        w_off[name] = (row, r, c)
        parts.append(jnp.zeros((rp, lanes), _F32).at[:r, :c].set(w))
        row += rp
    w_slab = jnp.concatenate(parts, axis=0)        # (rows_total, lanes)

    b_off, bparts = {}, []
    for i, (name, b) in enumerate(bias_rows):
        c = int(b.shape[1])
        b_off[name] = (i, c)
        bparts.append(jnp.zeros((1, lanes), _F32).at[:, :c].set(b))
    b_slab = jnp.concatenate(bparts, axis=0)       # (n_bias_rows, lanes)

    layout = dict(H=H, C=C, lanes=lanes, w_off=w_off, b_off=b_off)
    enc_kernel, pre_kernel = _make_kernels(layout)
    return dict(layout=layout, w_slab=w_slab, b_slab=b_slab,
                encoder_kernel=enc_kernel, pretrain_kernel=pre_kernel)


# ----------------------------------------------------------------------------
# Forward wrapper
# ----------------------------------------------------------------------------
def zsla_forward(kp, inputs, is_pretrain=False):
    layout = kp["layout"]
    H, C = layout["H"], layout["C"]

    image = inputs["image"]
    pos = inputs["agent_pos_encode"]
    B = image.shape[0]

    h_local = inputs.get("h_local")
    h_global = inputs.get("h_global")
    if h_local is None:
        h_local = jnp.zeros((2, B, H), _F32)
    if h_global is None:
        h_global = jnp.zeros((2, B, H), _F32)
    # hidden states travel as a single (2, 2, B, H) slab: [local | global]
    h_states = jnp.stack([h_local, h_global], axis=0)

    if not is_pretrain:
        args = (image, pos, h_states, kp["w_slab"], kp["b_slab"])
        return pl.pallas_call(
            kp["encoder_kernel"],
            out_shape=jax.ShapeDtypeStruct((B, 2 * H), _F32),
            in_specs=[_VMEM] * len(args),
            out_specs=_VMEM,
        )(*args)

    lq = inputs["local_query"]                      # (B, Q, 4)
    gq = inputs["global_query"]                     # (B, 12)
    Q = lq.shape[1]
    lq2 = lq.reshape(B * Q, lq.shape[2])            # trivial host-side reshape

    args = (image, pos, h_states, lq2, gq, kp["w_slab"], kp["b_slab"])
    new_h, loc_out, exprate = pl.pallas_call(
        kp["pretrain_kernel"],
        out_shape=(
            jax.ShapeDtypeStruct((2, 2, B, H), _F32),     # new hidden states
            jax.ShapeDtypeStruct((B * Q, 1 + C), _F32),   # [dist | cls] slab
            jax.ShapeDtypeStruct((B, 1), _F32),           # exploration rate
        ),
        in_specs=[_VMEM] * len(args),
        out_specs=(_VMEM,) * 3,
        input_output_aliases={2: 0},   # h_states slab -> new hidden-state slab
    )(*args)

    dist = loc_out[:, 0:1].reshape(B, Q, 1)
    cls = loc_out[:, 1:].reshape(B, Q, C)
    return dist, cls, exprate, new_h[0], new_h[1]


# ----------------------------------------------------------------------------
# Pure-JAX reference (uses the raw, un-packed parameters)
# ----------------------------------------------------------------------------
def _ref_gru_cell(x, h, g):
    H = g["whh"].shape[0]
    gi = x @ g["wih"] + g["bih"]
    gh = h @ g["whh"] + g["bhh"]
    r = jax.nn.sigmoid(gi[:, :H] + gh[:, :H])
    z = jax.nn.sigmoid(gi[:, H:2 * H] + gh[:, H:2 * H])
    n = jnp.tanh(gi[:, 2 * H:] + r * gh[:, 2 * H:])
    return (1.0 - z) * n + z * h


def ref_forward(p, inputs, is_pretrain=False):
    image = inputs["image"]
    pos = inputs["agent_pos_encode"]
    B = image.shape[0]
    H = p["l_gru0"]["whh"].shape[0]
    h_local = inputs.get("h_local", jnp.zeros((2, B, H), _F32))
    h_global = inputs.get("h_global", jnp.zeros((2, B, H), _F32))

    x = jnp.maximum(image @ p["ie_w1"] + p["ie_b1"], 0.0)
    x = jnp.maximum(x @ p["ie_w2"] + p["ie_b2"], 0.0)
    img_feat = x @ p["ie_w3"] + p["ie_b3"]

    x_local = jnp.concatenate([img_feat, pos], axis=1)
    h_l0 = _ref_gru_cell(x_local, h_local[0], p["l_gru0"])
    h_l1 = _ref_gru_cell(h_l0, h_local[1], p["l_gru1"])
    h_g0 = _ref_gru_cell(h_l1, h_global[0], p["g_gru0"])
    h_g1 = _ref_gru_cell(h_g0, h_global[1], p["g_gru1"])
    local_feature, global_feature = h_l1, h_g1

    if not is_pretrain:
        return jnp.concatenate([local_feature, global_feature], axis=1)

    lq = inputs["local_query"]
    gq = inputs["global_query"]
    Q = lq.shape[1]
    tmp = jnp.broadcast_to(local_feature[:, None, :], (B, Q, H))
    li = jnp.concatenate([tmp, lq], axis=2)
    dist = jnp.maximum(
        jnp.maximum(li @ p["ldd_w1"] + p["ldd_b1"], 0.0) @ p["ldd_w2"] + p["ldd_b2"], 0.0)
    cls = jnp.maximum(li @ p["lcd_w1"] + p["lcd_b1"], 0.0) @ p["lcd_w2"] + p["lcd_b2"]
    gi = jnp.concatenate([global_feature, gq], axis=1)
    exp = jax.nn.sigmoid(
        jnp.maximum(gi @ p["gd_w1"] + p["gd_b1"], 0.0) @ p["gd_w2"] + p["gd_b2"])
    return dist, cls, exp, jnp.stack([h_l0, h_l1]), jnp.stack([h_g0, h_g1])


# ----------------------------------------------------------------------------
# Main
# ----------------------------------------------------------------------------
if __name__ == "__main__":
    B = 2
    IMAGE_DIM = 64
    HIDDEN_DIM = 32
    QUERY_NUM = 8          # multiple of 8 keeps the in-kernel query reshape free
    NUM_CLASSES = 2

    key = jax.random.PRNGKey(0)
    k_param, k_img, k_pos, k_hl, k_hg, k_lq, k_gq = jax.random.split(key, 7)

    raw_params = init_params(k_param, IMAGE_DIM, HIDDEN_DIM, NUM_CLASSES)
    kparams = preprocess_params(raw_params)     # one-time weight packing

    inputs = {
        "image": jax.random.normal(k_img, (B, IMAGE_DIM), _F32),
        "agent_pos_encode": jax.random.normal(k_pos, (B, _POS_ENC + _ATT_ENC), _F32),
        "h_local": 0.1 * jax.random.normal(k_hl, (2, B, HIDDEN_DIM), _F32),
        "h_global": 0.1 * jax.random.normal(k_hg, (2, B, HIDDEN_DIM), _F32),
        "local_query": jax.random.normal(k_lq, (B, QUERY_NUM, _ATT_ENC), _F32),
        "global_query": jax.random.normal(k_gq, (B, _POS_ENC), _F32),
    }

    # ---- non-pretrain path: returns feature [B, 2*hidden_dim] ----
    feature = zsla_forward(kparams, inputs, is_pretrain=False)
    feature = jax.block_until_ready(feature)
    feat_ref = ref_forward(raw_params, inputs, is_pretrain=False)
    assert feature.shape == (B, 2 * HIDDEN_DIM)
    np.testing.assert_allclose(np.asarray(feature), np.asarray(feat_ref),
                               rtol=1e-4, atol=1e-4)

    # ---- pretrain path: distance / class / exprate / hidden states ----
    out = zsla_forward(kparams, inputs, is_pretrain=True)
    out = jax.block_until_ready(out)
    out_ref = ref_forward(raw_params, inputs, is_pretrain=True)
    assert out[0].shape == (B, QUERY_NUM, 1)
    assert out[1].shape == (B, QUERY_NUM, NUM_CLASSES)
    assert out[2].shape == (B, 1)
    assert out[3].shape == (2, B, HIDDEN_DIM) and out[4].shape == (2, B, HIDDEN_DIM)
    for a, b in zip(out, out_ref):
        np.testing.assert_allclose(np.asarray(a), np.asarray(b),
                                   rtol=1e-4, atol=1e-4)

    print("KERNEL_OK")
</pallas_src>

<mosaic_0001>
module attributes {stable_mosaic.version = 11 : i64} {
  func.func @encoder_kernel(%arg0: memref<2x64xf32, #tpu.memory_space<vmem>>, %arg1: memref<2x16xf32, #tpu.memory_space<vmem>>, %arg2: memref<2x2x2x32xf32, #tpu.memory_space<vmem>>, %arg3: memref<720x128xf32, #tpu.memory_space<vmem>>, %arg4: memref<11x128xf32, #tpu.memory_space<vmem>>, %arg5: memref<2x64xf32, #tpu.memory_space<vmem>>) attributes {dimension_semantics = [], scalar_prefetch = 0 : i64, scratch_operands = 0 : i64, tpu.core_type = #tpu.core_type<tc>} {
    %c0 = arith.constant 0 : index
    %c0_0 = arith.constant 0 : index
    %0 = vector.load %arg0[%c0, %c0_0] : memref<2x64xf32, #tpu.memory_space<vmem>>, vector<2x64xf32>
    %c0_1 = arith.constant 0 : index
    %c0_2 = arith.constant 0 : index
    %1 = vector.load %arg3[%c0_1, %c0_2] : memref<720x128xf32, #tpu.memory_space<vmem>>, vector<64x128xf32>
    %cst = arith.constant dense<0.000000e+00> : vector<2x128xf32>
    %2 = tpu.matmul %0, %1, %cst {dimension_numbers = #tpu.dot_dimension_numbers<[1], [0], [0], [1], [0, 0, 1, 1], [], []>} : vector<2x64xf32>, vector<64x128xf32>, vector<2x128xf32> -> vector<2x128xf32>
    %c0_3 = arith.constant 0 : index
    %c0_4 = arith.constant 0 : index
    %3 = vector.load %arg4[%c0_3, %c0_4] : memref<11x128xf32, #tpu.memory_space<vmem>>, vector<1x128xf32>
    %4 = vector.broadcast %3 : vector<1x128xf32> to vector<2x128xf32>
    %5 = arith.addf %2, %4 : vector<2x128xf32>
    %cst_5 = arith.constant 0.000000e+00 : f32
    %6 = vector.broadcast %cst_5 : f32 to vector<2x128xf32>
    %7 = arith.maximumf %5, %6 : vector<2x128xf32>
    %c64 = arith.constant 64 : index
    %c0_6 = arith.constant 0 : index
    %8 = vector.load %arg3[%c64, %c0_6] : memref<720x128xf32, #tpu.memory_space<vmem>>, vector<128x32xf32>
    %cst_7 = arith.constant dense<0.000000e+00> : vector<2x32xf32>
    %9 = tpu.matmul %7, %8, %cst_7 {dimension_numbers = #tpu.dot_dimension_numbers<[1], [0], [0], [1], [0, 0, 1, 1], [], []>} : vector<2x128xf32>, vector<128x32xf32>, vector<2x32xf32> -> vector<2x32xf32>
    %c1 = arith.constant 1 : index
    %c0_8 = arith.constant 0 : index
    %10 = vector.load %arg4[%c1, %c0_8] : memref<11x128xf32, #tpu.memory_space<vmem>>, vector<1x32xf32>
    %11 = vector.broadcast %10 : vector<1x32xf32> to vector<2x32xf32>
    %12 = arith.addf %9, %11 : vector<2x32xf32>
    %cst_9 = arith.constant 0.000000e+00 : f32
    %13 = vector.broadcast %cst_9 : f32 to vector<2x32xf32>
    %14 = arith.maximumf %12, %13 : vector<2x32xf32>
    %c192 = arith.constant 192 : index
    %c0_10 = arith.constant 0 : index
    %15 = vector.load %arg3[%c192, %c0_10] : memref<720x128xf32, #tpu.memory_space<vmem>>, vector<32x8xf32>
    %cst_11 = arith.constant dense<0.000000e+00> : vector<2x8xf32>
    %16 = tpu.matmul %14, %15, %cst_11 {dimension_numbers = #tpu.dot_dimension_numbers<[1], [0], [0], [1], [0, 0, 1, 1], [], []>} : vector<2x32xf32>, vector<32x8xf32>, vector<2x8xf32> -> vector<2x8xf32>
    %c2 = arith.constant 2 : index
    %c0_12 = arith.constant 0 : index
    %17 = vector.load %arg4[%c2, %c0_12] : memref<11x128xf32, #tpu.memory_space<vmem>>, vector<1x8xf32>
    %18 = vector.broadcast %17 : vector<1x8xf32> to vector<2x8xf32>
    %19 = arith.addf %16, %18 : vector<2x8xf32>
    %c0_13 = arith.constant 0 : index
    %c0_14 = arith.constant 0 : index
    %20 = vector.load %arg1[%c0_13, %c0_14] : memref<2x16xf32, #tpu.memory_space<vmem>>, vector<2x16xf32>
    %c0_15 = arith.constant 0 : index
    %c0_16 = arith.constant 0 : index
    %c0_17 = arith.constant 0 : index
    %c0_18 = arith.constant 0 : index
    %21 = vector.load %arg2[%c0_15, %c0_16, %c0_17, %c0_18] : memref<2x2x2x32xf32, #tpu.memory_space<vmem>>, vector<1x1x2x32xf32>
    %22 = vector.shape_cast %21 : vector<1x1x2x32xf32> to vector<2x32xf32>
    %c0_19 = arith.constant 0 : index
    %c1_20 = arith.constant 1 : index
    %c0_21 = arith.constant 0 : index
    %c0_22 = arith.constant 0 : index
    %23 = vector.load %arg2[%c0_19, %c1_20, %c0_21, %c0_22] : memref<2x2x2x32xf32, #tpu.memory_space<vmem>>, vector<1x1x2x32xf32>
    %24 = vector.shape_cast %23 : vector<1x1x2x32xf32> to vector<2x32xf32>
    %c1_23 = arith.constant 1 : index
    %c0_24 = arith.constant 0 : index
    %c0_25 = arith.constant 0 : index
    %c0_26 = arith.constant 0 : index
    %25 = vector.load %arg2[%c1_23, %c0_24, %c0_25, %c0_26] : memref<2x2x2x32xf32, #tpu.memory_space<vmem>>, vector<1x1x2x32xf32>
    %26 = vector.shape_cast %25 : vector<1x1x2x32xf32> to vector<2x32xf32>
    %c1_27 = arith.constant 1 : index
    %c1_28 = arith.constant 1 : index
    %c0_29 = arith.constant 0 : index
    %c0_30 = arith.constant 0 : index
    %27 = vector.load %arg2[%c1_27, %c1_28, %c0_29, %c0_30] : memref<2x2x2x32xf32, #tpu.memory_space<vmem>>, vector<1x1x2x32xf32>
    %28 = vector.shape_cast %27 : vector<1x1x2x32xf32> to vector<2x32xf32>
    %29 = tpu.concatenate %19, %20, %22 in 1 : vector<2x8xf32>, vector<2x16xf32>, vector<2x32xf32> -> vector<2x56xf32>
    %c224 = arith.constant 224 : index
    %c0_31 = arith.constant 0 : index
    %30 = vector.load %arg3[%c224, %c0_31] : memref<720x128xf32, #tpu.memory_space<vmem>>, vector<56x128xf32>
    %c3 = arith.constant 3 : index
    %c0_32 = arith.constant 0 : index
    %31 = vector.load %arg4[%c3, %c0_32] : memref<11x128xf32, #tpu.memory_space<vmem>>, vector<1x128xf32>
    %cst_33 = arith.constant dense<0.000000e+00> : vector<2x128xf32>
    %32 = tpu.matmul %29, %30, %cst_33 {dimension_numbers = #tpu.dot_dimension_numbers<[1], [0], [0], [1], [0, 0, 1, 1], [], []>} : vector<2x56xf32>, vector<56x128xf32>, vector<2x128xf32> -> vector<2x128xf32>
    %33 = vector.broadcast %31 : vector<1x128xf32> to vector<2x128xf32>
    %34 = arith.addf %32, %33 : vector<2x128xf32>
    %35 = vector.extract_strided_slice %34 {offsets = [0, 0], sizes = [2, 32], strides = [1, 1]} : vector<2x128xf32> to vector<2x32xf32>
    %36 = arith.negf %35 : vector<2x32xf32>
    %37 = math.exp %36 : vector<2x32xf32>
    %cst_34 = arith.constant 1.000000e+00 : f32
    %38 = vector.broadcast %cst_34 : f32 to vector<2x32xf32>
    %39 = arith.addf %38, %37 : vector<2x32xf32>
    %40 = arith.divf %38, %39 : vector<2x32xf32>
    %41 = vector.extract_strided_slice %34 {offsets = [0, 32], sizes = [2, 32], strides = [1, 1]} : vector<2x128xf32> to vector<2x32xf32>
    %42 = arith.negf %41 : vector<2x32xf32>
    %43 = math.exp %42 : vector<2x32xf32>
    %cst_35 = arith.constant 1.000000e+00 : f32
    %44 = vector.broadcast %cst_35 : f32 to vector<2x32xf32>
    %45 = arith.addf %44, %43 : vector<2x32xf32>
    %46 = arith.divf %44, %45 : vector<2x32xf32>
    %47 = vector.extract_strided_slice %34 {offsets = [0, 64], sizes = [2, 32], strides = [1, 1]} : vector<2x128xf32> to vector<2x32xf32>
    %48 = vector.extract_strided_slice %34 {offsets = [0, 96], sizes = [2, 32], strides = [1, 1]} : vector<2x128xf32> to vector<2x32xf32>
    %49 = arith.mulf %40, %48 : vector<2x32xf32>
    %50 = arith.addf %47, %49 : vector<2x32xf32>
    %51 = math.tanh %50 : vector<2x32xf32>
    %52 = arith.subf %22, %51 : vector<2x32xf32>
    %53 = arith.mulf %46, %52 : vector<2x32xf32>
    %54 = arith.addf %51, %53 : vector<2x32xf32>
    %55 = tpu.concatenate %54, %24 in 1 : vector<2x32xf32>, vector<2x32xf32> -> vector<2x64xf32>
    %c280 = arith.constant 280 : index
    %c0_36 = arith.constant 0 : index
    %56 = vector.load %arg3[%c280, %c0_36] : memref<720x128xf32, #tpu.memory_space<vmem>>, vector<64x128xf32>
    %c4 = arith.constant 4 : index
    %c0_37 = arith.constant 0 : index
    %57 = vector.load %arg4[%c4, %c0_37] : memref<11x128xf32, #tpu.memory_space<vmem>>, vector<1x128xf32>
    %cst_38 = arith.constant dense<0.000000e+00> : vector<2x128xf32>
    %58 = tpu.matmul %55, %56, %cst_38 {dimension_numbers = #tpu.dot_dimension_numbers<[1], [0], [0], [1], [0, 0, 1, 1], [], []>} : vector<2x64xf32>, vector<64x128xf32>, vector<2x128xf32> -> vector<2x128xf32>
    %59 = vector.broadcast %57 : vector<1x128xf32> to vector<2x128xf32>
    %60 = arith.addf %58, %59 : vector<2x128xf32>
    %61 = vector.extract_strided_slice %60 {offsets = [0, 0], sizes = [2, 32], strides = [1, 1]} : vector<2x128xf32> to vector<2x32xf32>
    %62 = arith.negf %61 : vector<2x32xf32>
    %63 = math.exp %62 : vector<2x32xf32>
    %cst_39 = arith.constant 1.000000e+00 : f32
    %64 = vector.broadcast %cst_39 : f32 to vector<2x32xf32>
    %65 = arith.addf %64, %63 : vector<2x32xf32>
    %66 = arith.divf %64, %65 : vector<2x32xf32>
    %67 = vector.extract_strided_slice %60 {offsets = [0, 32], sizes = [2, 32], strides = [1, 1]} : vector<2x128xf32> to vector<2x32xf32>
    %68 = arith.negf %67 : vector<2x32xf32>
    %69 = math.exp %68 : vector<2x32xf32>
    %cst_40 = arith.constant 1.000000e+00 : f32
    %70 = vector.broadcast %cst_40 : f32 to vector<2x32xf32>
    %71 = arith.addf %70, %69 : vector<2x32xf32>
    %72 = arith.divf %70, %71 : vector<2x32xf32>
    %73 = vector.extract_strided_slice %60 {offsets = [0, 64], sizes = [2, 32], strides = [1, 1]} : vector<2x128xf32> to vector<2x32xf32>
    %74 = vector.extract_strided_slice %60 {offsets = [0, 96], sizes = [2, 32], strides = [1, 1]} : vector<2x128xf32> to vector<2x32xf32>
    %75 = arith.mulf %66, %74 : vector<2x32xf32>
    %76 = arith.addf %73, %75 : vector<2x32xf32>
    %77 = math.tanh %76 : vector<2x32xf32>
    %78 = arith.subf %24, %77 : vector<2x32xf32>
    %79 = arith.mulf %72, %78 : vector<2x32xf32>
    %80 = arith.addf %77, %79 : vector<2x32xf32>
    %81 = tpu.concatenate %80, %26 in 1 : vector<2x32xf32>, vector<2x32xf32> -> vector<2x64xf32>
    %c344 = arith.constant 344 : index
    %c0_41 = arith.constant 0 : index
    %82 = vector.load %arg3[%c344, %c0_41] : memref<720x128xf32, #tpu.memory_space<vmem>>, vector<64x128xf32>
    %c5 = arith.constant 5 : index
    %c0_42 = arith.constant 0 : index
    %83 = vector.load %arg4[%c5, %c0_42] : memref<11x128xf32, #tpu.memory_space<vmem>>, vector<1x128xf32>
    %cst_43 = arith.constant dense<0.000000e+00> : vector<2x128xf32>
    %84 = tpu.matmul %81, %82, %cst_43 {dimension_numbers = #tpu.dot_dimension_numbers<[1], [0], [0], [1], [0, 0, 1, 1], [], []>} : vector<2x64xf32>, vector<64x128xf32>, vector<2x128xf32> -> vector<2x128xf32>
    %85 = vector.broadcast %83 : vector<1x128xf32> to vector<2x128xf32>
    %86 = arith.addf %84, %85 : vector<2x128xf32>
    %87 = vector.extract_strided_slice %86 {offsets = [0, 0], sizes = [2, 32], strides = [1, 1]} : vector<2x128xf32> to vector<2x32xf32>
    %88 = arith.negf %87 : vector<2x32xf32>
    %89 = math.exp %88 : vector<2x32xf32>
    %cst_44 = arith.constant 1.000000e+00 : f32
    %90 = vector.broadcast %cst_44 : f32 to vector<2x32xf32>
    %91 = arith.addf %90, %89 : vector<2x32xf32>
    %92 = arith.divf %90, %91 : vector<2x32xf32>
    %93 = vector.extract_strided_slice %86 {offsets = [0, 32], sizes = [2, 32], strides = [1, 1]} : vector<2x128xf32> to vector<2x32xf32>
    %94 = arith.negf %93 : vector<2x32xf32>
    %95 = math.exp %94 : vector<2x32xf32>
    %cst_45 = arith.constant 1.000000e+00 : f32
    %96 = vector.broadcast %cst_45 : f32 to vector<2x32xf32>
    %97 = arith.addf %96, %95 : vector<2x32xf32>
    %98 = arith.divf %96, %97 : vector<2x32xf32>
    %99 = vector.extract_strided_slice %86 {offsets = [0, 64], sizes = [2, 32], strides = [1, 1]} : vector<2x128xf32> to vector<2x32xf32>
    %100 = vector.extract_strided_slice %86 {offsets = [0, 96], sizes = [2, 32], strides = [1, 1]} : vector<2x128xf32> to vector<2x32xf32>
    %101 = arith.mulf %92, %100 : vector<2x32xf32>
    %102 = arith.addf %99, %101 : vector<2x32xf32>
    %103 = math.tanh %102 : vector<2x32xf32>
    %104 = arith.subf %26, %103 : vector<2x32xf32>
    %105 = arith.mulf %98, %104 : vector<2x32xf32>
    %106 = arith.addf %103, %105 : vector<2x32xf32>
    %107 = tpu.concatenate %106, %28 in 1 : vector<2x32xf32>, vector<2x32xf32> -> vector<2x64xf32>
    %c408 = arith.constant 408 : index
    %c0_46 = arith.constant 0 : index
    %108 = vector.load %arg3[%c408, %c0_46] : memref<720x128xf32, #tpu.memory_space<vmem>>, vector<64x128xf32>
    %c6 = arith.constant 6 : index
    %c0_47 = arith.constant 0 : index
    %109 = vector.load %arg4[%c6, %c0_47] : memref<11x128xf32, #tpu.memory_space<vmem>>, vector<1x128xf32>
    %cst_48 = arith.constant dense<0.000000e+00> : vector<2x128xf32>
    %110 = tpu.matmul %107, %108, %cst_48 {dimension_numbers = #tpu.dot_dimension_numbers<[1], [0], [0], [1], [0, 0, 1, 1], [], []>} : vector<2x64xf32>, vector<64x128xf32>, vector<2x128xf32> -> vector<2x128xf32>
    %111 = vector.broadcast %109 : vector<1x128xf32> to vector<2x128xf32>
    %112 = arith.addf %110, %111 : vector<2x128xf32>
    %113 = vector.extract_strided_slice %112 {offsets = [0, 0], sizes = [2, 32], strides = [1, 1]} : vector<2x128xf32> to vector<2x32xf32>
    %114 = arith.negf %113 : vector<2x32xf32>
    %115 = math.exp %114 : vector<2x32xf32>
    %cst_49 = arith.constant 1.000000e+00 : f32
    %116 = vector.broadcast %cst_49 : f32 to vector<2x32xf32>
    %117 = arith.addf %116, %115 : vector<2x32xf32>
    %118 = arith.divf %116, %117 : vector<2x32xf32>
    %119 = vector.extract_strided_slice %112 {offsets = [0, 32], sizes = [2, 32], strides = [1, 1]} : vector<2x128xf32> to vector<2x32xf32>
    %120 = arith.negf %119 : vector<2x32xf32>
    %121 = math.exp %120 : vector<2x32xf32>
    %cst_50 = arith.constant 1.000000e+00 : f32
    %122 = vector.broadcast %cst_50 : f32 to vector<2x32xf32>
    %123 = arith.addf %122, %121 : vector<2x32xf32>
    %124 = arith.divf %122, %123 : vector<2x32xf32>
    %125 = vector.extract_strided_slice %112 {offsets = [0, 64], sizes = [2, 32], strides = [1, 1]} : vector<2x128xf32> to vector<2x32xf32>
    %126 = vector.extract_strided_slice %112 {offsets = [0, 96], sizes = [2, 32], strides = [1, 1]} : vector<2x128xf32> to vector<2x32xf32>
    %127 = arith.mulf %118, %126 : vector<2x32xf32>
    %128 = arith.addf %125, %127 : vector<2x32xf32>
    %129 = math.tanh %128 : vector<2x32xf32>
    %130 = arith.subf %28, %129 : vector<2x32xf32>
    %131 = arith.mulf %124, %130 : vector<2x32xf32>
    %132 = arith.addf %129, %131 : vector<2x32xf32>
    %c0_51 = arith.constant 0 : index
    %c0_52 = arith.constant 0 : index
    %133 = vector.load %arg5[%c0_51, %c0_52] : memref<2x64xf32, #tpu.memory_space<vmem>>, vector<2x32xf32>
    tpu.vector_store %arg5[%c0_51, %c0_52], %80 {strides = array<i32>} : memref<2x64xf32, #tpu.memory_space<vmem>>, vector<2x32xf32>,
    %c0_53 = arith.constant 0 : index
    %c32 = arith.constant 32 : index
    %134 = vector.load %arg5[%c0_53, %c32] : memref<2x64xf32, #tpu.memory_space<vmem>>, vector<2x32xf32>
    tpu.vector_store %arg5[%c0_53, %c32], %132 {strides = array<i32>} : memref<2x64xf32, #tpu.memory_space<vmem>>, vector<2x32xf32>,
    return
  }
}

</mosaic_0001>

<bundles_post_ra>
// kernel: tpu_custom_call.1
= control target key start
LH: loop header
LB: loop body
LE: loop exit
PB: predicated region body
PF: predicated region fallthrough
CT: control target
= control target key end

     0   :  { %10 = vsyncpa [#allocation3], 0  ;;  %s900_s0 = inlined_call_operand.hbm [shape: f32[2,64], index: 0, kind: input, shape index: {}]   ;;  %s901_s1 = inlined_call_operand.hbm [shape: f32[2,16], index: 1, kind: input, shape index: {}]   ;;  %s902_s2 = inlined_call_operand.hbm [shape: f32[2,2,2,32], index: 2, kind: input, shape index: {}]   ;;  %s903_s3 = inlined_call_operand.hbm [shape: f32[720,128], index: 3, kind: input, shape index: {}]   ;;  %s904_s4 = inlined_call_operand.hbm [shape: f32[11,128], index: 4, kind: input, shape index: {}]   ;;  %s905_s5 = inlined_call_operand.hbm [shape: f32[2,64], index: 5, kind: output, shape index: {}]  }
   0x1   :  { %11 = vsyncpa [#allocation6], 0 }
   0x2   :  { %12 = vsyncpa [#allocation9], 0  ;;  %s30_s20 = sshll.u32 %s901_s1, 4  ;;  %s31_s20 = int_to_ptr.hbm [resolvable:$true] %s30_s20 }
   0x3   :  { %13 = vsyncpa [#allocation4], 0  ;;  %s792_s21 = smov [#allocation5]   ;;  %s53_s25 = sshll.u32 %s903_s3, 4  ;;  %s54_s25 = int_to_ptr.hbm [resolvable:$true] %s53_s25 }
   0x4   :  { %s32_s22 = sshll.u32 %s792_s21, 4  ;;  %s793_s26 = smov [#allocation8]   ;;  %s33_s22 = int_to_ptr.vmem [resolvable:$true] %s32_s22 }
   0x5   :  { %35 = dma.hbm_to_vmem [thread:$0]  %s31_s20, 32, %s33_s22, [#allocation6]  }
   0x6   :  { %s55_s27 = sshll.u32 %s793_s26, 4  ;;  %s794_s28 = smov 128   ;;  %s56_s27 = int_to_ptr.vmem [resolvable:$true] %s55_s27 }
   0x7   :  { %s795_s29 = smov 8   ;;  %s19_s6 = sshll.u32 %s900_s0, 4  ;;  %s20_s6 = int_to_ptr.hbm [resolvable:$true] %s19_s6 }
   0x8   :  { %61 = dma.hbm_to_vmem [thread:$0]  %s54_s25, 11520, %s56_s27, [#allocation9], %s794_s28, %s794_s28, %s795_s29  }
   0x9   :  { %s796_s7 = smov [#allocation2]   ;;  %s40_s3 = sshll.u32 %s902_s2, 4  ;;  %s41_s3 = int_to_ptr.hbm [resolvable:$true] %s40_s3 }
   0xa   :  { %s21_s8 = sshll.u32 %s796_s7, 4  ;;  %s797_s11 = smov [#allocation7]   ;;  %s22_s8 = int_to_ptr.vmem [resolvable:$true] %s21_s8 }
   0xb   :  { %24 = dma.hbm_to_vmem [thread:$0]  %s20_s6, 32, %s22_s8, [#allocation3]  }
   0xc   :  { %s42_s12 = sshll.u32 %s797_s11, 4  ;;  %s798_s13 = smov 32   ;;  %s43_s12 = int_to_ptr.vmem [resolvable:$true] %s42_s12 }
   0xd   :  { %s799_s14 = smov 2   ;;  %s66_s16 = sshll.u32 %s904_s4, 4  ;;  %s67_s16 = int_to_ptr.hbm [resolvable:$true] %s66_s16 }
   0xe   :  { %48 = dma.hbm_to_vmem [thread:$0]  %s41_s3, 128, %s43_s12, [#allocation6], %s798_s13, %s798_s13, %s799_s14  }
   0xf   :  { %s800_s17 = smov [#allocation10]  }
  0x10   :  { %s68_s18 = sshll.u32 %s800_s17, 4  ;;  %s69_s18 = int_to_ptr.vmem [resolvable:$true] %s68_s18 }
  0x11   :  { %74 = dma.hbm_to_vmem [thread:$0]  %s67_s16, 256, %s69_s18, [#allocation9], %s794_s28, %s794_s28, %s795_s29  }
  0x12   :  { %784 = dma.done.wait [#allocation3], 32  }
  0x13   :  { %785 = vsyncadd [#allocation3], 4294967264 }
  0x14   :  { %786 = dma.done.wait [#allocation6], 160  }
  0x15   :  { %787 = vsyncadd [#allocation6], 4294967136 }
  0x16   :  { %788 = dma.done.wait [#allocation9], 11776  }
  0x17   :  { %789 = vsyncadd [#allocation9], 4294955520  ;;  %v103_v0 = vld [vmem:[#allocation8 + $0x38] sm:$0xff]  ;;  %v102_v1 = vld [vmem:[#allocation8 + $0x30] sm:$0xff]  ;;  %vm106_vm0 = vcmask 523264   ;;  %s801_s2 = smov 24  }
  0x18   :  { %118 = vmatpush.msra.mxu0 %v103_v0  ;;  %v101_v2 = vld [vmem:[#allocation8 + $0x28] sm:$0xff]  ;;  %v146_v3 = vld [vmem:[#allocation8 + $0xb8] sm:$0xff]  ;;  %v145_v4 = vld [vmem:[#allocation8 + $0xb0] sm:$0xff]  ;;  %vm176_vm1 = vcmask 261120   ;;  %vm216_vm2 = vcmask 64512   ;;  %vm218_vm3 = vcmask 195584  }
  0x19   :  { %v100_v5 = vld [vmem:[#allocation8 + $0x20] sm:$0xff]  ;;  %149 = vmatpush.msra.mxu1 %v146_v3  ;;  %v144_v6 = vld [vmem:[#allocation8 + $0xa8] sm:$0xff]  ;;  %v99_v7 = vld [vmem:[#allocation8 + $0x18] sm:$0xff]  ;;  %vm229_vm4 = vcmask 457728   ;;  %s802_s4 = smov 64   ;;  %vm559_vm13 = vcmask 254976  }
  0x1a   :  { %119 = vmatpush.msra.mxu0 %v102_v1  ;;  %v98_v8 = vld [vmem:[#allocation8 + $0x10] sm:$0xff]  ;;  %v143_v9 = vld [vmem:[#allocation8 + $0xa0] sm:$0xff]  ;;  %v142_v10 = vld [vmem:[#allocation8 + $0x98] sm:$0xff]  ;;  %s803_s19 = smov 96   ;;  %s804_s20 = smov [#allocation11]  }
  0x1b   :  { %150 = vmatpush.msra.mxu1 %v145_v4  ;;  %v97_v11 = vld [vmem:[#allocation8 + $0x8] sm:$0xff]  ;;  %v141_v12 = vld [vmem:[#allocation8 + $0x90] sm:$0xff]  ;;  %v96_v13 = vld [vmem:[#allocation8] sm:$0xff]  ;;  %s572_s21 = sshll.u32 %s804_s20, 4  ;;  %s574_s24 = sshll.u32 %s905_s5, 4  ;;  %s573_s21 = int_to_ptr.vmem [resolvable:$true] %s572_s21  ;;  %s575_s24 = int_to_ptr.hbm [resolvable:$true] %s574_s24 }
  0x1c   :  { %120 = vmatpush.msra.mxu0 %v101_v2  ;;  %v95_v14 = vld [vmem:[#allocation2] sm:$0x3]  ;;  %v140_v15 = vld [vmem:[#allocation8 + $0x88] sm:$0xff]  ;;  %v139_v16 = vld [vmem:[#allocation8 + $0x80] sm:$0xff] }
  0x1d   :  { %151 = vmatpush.msra.mxu1 %v144_v6  ;;  %v138_v17 = vld [vmem:[#allocation8 + $0x78] sm:$0xff]  ;;  %v137_v18 = vld [vmem:[#allocation8 + $0x70] sm:$0xff]  ;;  %v136_v19 = vld [vmem:[#allocation8 + $0x68] sm:$0xff] }
  0x1e   :  { %121 = vmatpush.msra.mxu0 %v100_v5  ;;  %v135_v20 = vld [vmem:[#allocation8 + $0x60] sm:$0xff]  ;;  %v134_v21 = vld [vmem:[#allocation8 + $0x58] sm:$0xff]  ;;  %v133_v22 = vld [vmem:[#allocation8 + $0x50] sm:$0xff] }
  0x1f   :  { %152 = vmatpush.msra.mxu1 %v143_v9  ;;  %v132_v23 = vld [vmem:[#allocation8 + $0x48] sm:$0xff]  ;;  %v131_v24 = vld [vmem:[#allocation8 + $0x40] sm:$0xff]  ;;  %v173_v25 = vld [vmem:[#allocation8 + $0xd8] sm:$0xff] }
  0x20   :  { %122 = vmatpush.msra.mxu0 %v99_v7  ;;  %192 = vmatpush.msra.mxu2 %v173_v25  ;;  %v609_v26 = vld [vmem:[#allocation10] ss:$0 sm:$0xff]  ;;  %v171_v31 = vld [vmem:[#allocation8 + $0xc8] sm:$0xff]  ;;  %v170_v32 = vld [vmem:[#allocation8 + $0xc0] sm:$0xff] }
  0x21   :  { %153 = vmatpush.msra.mxu1 %v142_v10  ;;  %v172_v30 = vld [vmem:[#allocation8 + $0xd0] sm:$0xff]  ;;  %v225_v35 = vld [vmem:[#allocation8 + $0x108] sm:$0xff]  ;;  %v856_v36 = vld [vmem:[#allocation7] sm:$0x3] }
  0x22   :  { %123 = vmatpush.msra.mxu0 %v98_v8  ;;  %193 = vmatpush.msra.mxu2 %v172_v30  ;;  %v200_v33 = vld [vmem:[#allocation5] sm:$0x3]  ;;  %v610_v37 = vld [vmem:[#allocation10 + $0x1] ss:$0 sm:$0xff]  ;;  %v224_v41 = vld [vmem:[#allocation8 + $0x100] sm:$0xff] }
  0x23   :  { %154 = vmatpush.msra.mxu1 %v141_v12  ;;  %v226_v34 = vld [vmem:[#allocation8 + $0x110] sm:$0xff]  ;;  %209 = vrot.lane.b32.xlu0 %v200_v33, %s795_s29  ;;  %v223_v42 = vld [vmem:[#allocation8 + $0xf8] sm:$0xff]  ;;  %v221_v44 = vld [vmem:[#allocation8 + $0xe8] sm:$0xff] }
  0x24   :  { %124 = vmatpush.msra.mxu0 %v97_v11  ;;  %194 = vmatpush.msra.mxu2 %v171_v31  ;;  %v222_v43 = vld [vmem:[#allocation8 + $0xf0] sm:$0xff]  ;;  %v220_v45 = vld [vmem:[#allocation8 + $0xe0] sm:$0xff] }
  0x25   :  { %155 = vmatpush.msra.mxu1 %v140_v15  ;;  %242 = vmatpush.msra.mxu3 %v226_v34  ;;  %v611_v47 = vld [vmem:[#allocation10 + $0x2] ss:$0 sm:$0xff]  ;;  %v612_v53 = vld [vmem:[#allocation10 + $0x3] ss:$0 sm:$0xff] }
  0x26   :  { %125 = vmatpush.msra.mxu0 %v96_v13  ;;  %195 = vmatpush.msra.mxu2 %v170_v32  ;;  %v314_v15 = vld [vmem:[#allocation8 + $0x150] sm:$0xff] }
  0x27   :  { %586 = vmatmul.msk.f32.vlgmr.msra.gmra.mxu0 %vm106_vm0, %v95_v14  ;;  %156 = vmatpush.msra.mxu1 %v139_v16  ;;  %v203_v14 = vld [vmem:[#allocation7 + $0x2] sm:$0x3]  ;;  %v313_v16 = vld [vmem:[#allocation8 + $0x148] sm:$0xff] }
  0x28   :  { %243 = vmatpush.msra.mxu3 %v225_v35  ;;  %328 = vmatpush.msrb.mxu2 %v314_v15 }
  0x29   :  { %157 = vmatpush.msra.mxu1 %v138_v17  ;;  %v312_v17 = vld [vmem:[#allocation8 + $0x140] sm:$0xff] }
  0x2a   :  { %244 = vmatpush.msra.mxu3 %v224_v41  ;;  %329 = vmatpush.msrb.mxu2 %v313_v16 }
  0x2b   :  { %158 = vmatpush.msra.mxu1 %v137_v18  ;;  %213 = vrot.lane.b32.xlu0 %v856_v36, %s801_s2  ;;  %v311_v18 = vld [vmem:[#allocation8 + $0x138] sm:$0xff] }
  0x2c   :  { %245 = vmatpush.msra.mxu3 %v223_v42  ;;  %330 = vmatpush.msrb.mxu2 %v312_v17 }
  0x2d   :  { %159 = vmatpush.msra.mxu1 %v136_v19  ;;  %v310_v19 = vld [vmem:[#allocation8 + $0x130] sm:$0xff] }
  0x2e   :  { %246 = vmatpush.msra.mxu3 %v222_v43  ;;  %331 = vmatpush.msrb.mxu2 %v311_v18 }
  0x2f   :  { %160 = vmatpush.msra.mxu1 %v135_v20  ;;  %v309_v20 = vld [vmem:[#allocation8 + $0x128] sm:$0xff] }
  0x30   :  { %247 = vmatpush.msra.mxu3 %v221_v44  ;;  %332 = vmatpush.msrb.mxu2 %v310_v19 }
  0x31   :  { %161 = vmatpush.msra.mxu1 %v134_v21  ;;  %v308_v21 = vld [vmem:[#allocation8 + $0x120] sm:$0xff] }
  0x32   :  { %248 = vmatpush.msra.mxu3 %v220_v45  ;;  %333 = vmatpush.msrb.mxu2 %v309_v20 }
  0x33   :  { %162 = vmatpush.msra.mxu1 %v133_v22 }
  0x34   :  { %334 = vmatpush.msrb.mxu2 %v308_v21 }
  0x35   :  { %163 = vmatpush.msra.mxu1 %v132_v23 }
  0x37   :  { %164 = vmatpush.msra.mxu1 %v131_v24  ;;  %v307_v24 = vld [vmem:[#allocation8 + $0x118] sm:$0xff] }
  0x38   :  { %335 = vmatpush.msrb.mxu2 %v307_v24 }
  0x95   :  { %v210_v46 = vpop.permute.xlu0 %209 }
  0x9d   :  { %v214_v50 = vpop.permute.xlu0 %213 }
  0xa4   :  { %v127_v27 = vpop.f32.mrf.mxu0 }
  0xa5   :  { %v128_v28 = vadd.f32 %v609_v26, %v127_v27 }
  0xa7   :  { %v130_v29 = vmax.f32 %v128_v28, 0.0  ;;  %v613_v28 = vld [vmem:[#allocation10 + $0x4] ss:$0 sm:$0xff] }
  0xa9   :  { %165 = vmatmul.f32.vlgmr.msra.gmra.mxu1 %v130_v29 }
 0x126   :  { %v166_v38 = vpop.f32.mrf.mxu1 }
 0x127   :  { %v167_v39 = vadd.f32 %v610_v37, %v166_v38 }
 0x129   :  { %v169_v40 = vmax.f32 %v167_v39, 0.0 }
 0x12b   :  { %587 = vmatmul.msk.f32.vlgmr.msra.gmra.mxu2 %vm176_vm1, %v169_v40 }
 0x1ae   :  { %v197_v48 = vpop.f32.mrf.mxu2 }
 0x1af   :  { %v198_v49 = vadd.f32 %v611_v47, %v197_v48 }
 0x1b1   :  { %v217_v51 = vsel %vm216_vm2, %v198_v49, %v210_v46 }
 0x1b2   :  { %v219_v52 = vsel %vm218_vm3, %v217_v51, %v214_v50  ;;  %v874_v51 = vld [vmem:[#allocation7 + $0x4] sm:$0x3] }
 0x1b3   :  { %588 = vmatmul.msk.f32.vlgmr.msra.gmra.mxu3 %vm229_vm4, %v219_v52 }
 0x236   :  { %v250_v54 = vpop.f32.mrf.mxu3 }
 0x237   :  { %v251_v55 = vadd.f32 %v612_v53, %v250_v54  ;;  %v401_v54 = vld [vmem:[#allocation8 + $0x190] sm:$0xff] }
 0x238   :  { %415 = vmatpush.msrb.mxu3 %v401_v54 }
 0x239   :  { %273 = vrot.lane.b32.xlu1 %v251_v55, %s798_s13  ;;  %v589_v56 = vmul.f32 -1.442695, %v251_v55 }
 0x23b   :  { %616 = vpow2.f32 %v589_v56  ;;  %v399_v56 = vld [vmem:[#allocation8 + $0x180] sm:$0xff] }
 0x241   :  { %v617_v57 = vpop.eup %616 }
 0x242   :  { %v256_v58 = vadd.f32 1.0, %v617_v57  ;;  %v398_v57 = vld [vmem:[#allocation8 + $0x178] sm:$0xff] }
 0x244   :  { %618 = vrcp.f32 %v256_v58  ;;  %v268_v0 = vand.u32 2147483648, %v256_v58  ;;  %vm262_vm6 = vweird.f32 %v256_v58  ;;  %v266_v1 = vand.u32 2147483647, %v256_v58 }
 0x246   :  { %v269_v3 = vor.u32 1.1754944e-38, %v268_v0  ;;  %vm267_vm8 = vcmp.eq.f32.partialorder %v266_v1, 8.507059e+37 }
 0x24a   :  { %v619_v59 = vpop.eup %618 }
 0x24b   :  { %v258_v60 = vmul.f32 %v619_v59, %v256_v58  ;;  %vm263_vm5 = vweird.f32 %v619_v59  ;;  %v397_v58 = vld [vmem:[#allocation8 + $0x170] sm:$0xff] }
 0x24c   :  { %vm264_vm7 = vmor %vm262_vm6, %vm263_vm5  ;;  %vm565_vm6 = vcmask 517376  }
 0x24d   :  { %v259_v61 = vsub.f32 1.0, %v258_v60  ;;  %v395_v60 = vld [vmem:[#allocation8 + $0x160] sm:$0xff] }
 0x24f   :  { %v260_v62 = vmul.f32 %v619_v59, %v259_v61 }
 0x251   :  { %v261_v63 = vadd.f32 %v619_v59, %v260_v62 }
 0x253   :  { %v265_v2 = vsel %vm264_vm7, %v619_v59, %v261_v63  ;;  %v396_v59 = vld [vmem:[#allocation8 + $0x168] sm:$0xff]  ;;  %v394_v63 = vld [vmem:[#allocation8 + $0x158] sm:$0xff] }
 0x254   :  { %v270_v5 = vsel %vm267_vm8, %v269_v3, %v265_v2  ;;  %v614_v3 = vld [vmem:[#allocation10 + $0x5] ss:$0 sm:$0xff] }
 0x2ab   :  { %v274_v4 = vpop.permute.xlu1 %273 }
 0x2ac   :  { %v276_v6 = vmul.f32 %v274_v4, %v270_v5 }
 0x2ae   :  { %278 = vrot.lane.b32.xlu1 %v276_v6, %s802_s4 }
 0x320   :  { %v279_v7 = vpop.permute.xlu1 %278 }
 0x321   :  { %v281_v8 = vadd.f32 %v279_v7, %v251_v55  ;;  %v400_v55 = vld [vmem:[#allocation8 + $0x188] sm:$0xff] }
 0x322   :  { %416 = vmatpush.msrb.mxu3 %v400_v55 }
 0x323   :  { %620 = vtanh.f32 %v281_v8 }
 0x324   :  { %417 = vmatpush.msrb.mxu3 %v399_v56 }
 0x326   :  { %418 = vmatpush.msrb.mxu3 %v398_v57 }
 0x328   :  { %419 = vmatpush.msrb.mxu3 %v397_v58 }
 0x329   :  { %v621_v9 = vpop.eup %620 }
 0x32a   :  { %284 = vrot.lane.b32.xlu2 %v621_v9, %s802_s4  ;;  %420 = vmatpush.msrb.mxu3 %v396_v59 }
 0x32c   :  { %421 = vmatpush.msrb.mxu3 %v395_v60 }
 0x32e   :  { %422 = vmatpush.msrb.mxu3 %v394_v63 }
 0x384   :  { %v285_v10 = vpop.permute.xlu2 %284 }
 0x385   :  { %v287_v11 = vsub.f32 %v856_v36, %v285_v10 }
 0x387   :  { %289 = vrot.lane.b32.xlu2 %v287_v11, %s798_s13 }
 0x38f   :  { %303 = vrot.lane.b32.xlu2 %v203_v14, %s798_s13 }
 0x3e1   :  { %v290_v12 = vpop.permute.xlu2 %289 }
 0x3e2   :  { %v292_v13 = vmul.f32 %v290_v12, %v270_v5 }
 0x3e4   :  { %294 = vrot.lane.b32.xlu0 %v292_v13, %s798_s13 }
 0x3e9   :  { %v304_v25 = vpop.permute.xlu2 %303 }
 0x456   :  { %v295_v22 = vpop.permute.xlu0 %294 }
 0x457   :  { %v297_v23 = vadd.f32 %v621_v9, %v295_v22 }
 0x459   :  { %299 = vrot.lane.b32.xlu1 %v297_v23, %s802_s4 }
 0x4cb   :  { %v300_v26 = vpop.permute.xlu1 %299 }
 0x4cc   :  { %v306_v27 = vsel %vm176_vm1, %v300_v26, %v304_v25 }
 0x4cd   :  { %590 = vmatmul.msk.f32.vlgmr.msrb.gmra.mxu2 %vm106_vm0, %v306_v27 }
 0x550   :  { %v337_v29 = vpop.f32.mrf.mxu2 }
 0x551   :  { %v338_v30 = vadd.f32 %v613_v28, %v337_v29  ;;  %v207_v28 = vld [vmem:[#allocation7 + $0x6] sm:$0x3]  ;;  %v488_v29 = vld [vmem:[#allocation8 + $0x1d0] sm:$0xff] }
 0x552   :  { %502 = vmatpush.msrb.mxu0 %v488_v29 }
 0x553   :  { %360 = vrot.lane.b32.xlu0 %v338_v30, %s798_s13  ;;  %v591_v31 = vmul.f32 -1.442695, %v338_v30 }
 0x555   :  { %622 = vpow2.f32 %v591_v31  ;;  %v486_v31 = vld [vmem:[#allocation8 + $0x1c0] sm:$0xff] }
 0x55b   :  { %v623_v32 = vpop.eup %622 }
 0x55c   :  { %v343_v33 = vadd.f32 1.0, %v623_v32  ;;  %v485_v32 = vld [vmem:[#allocation8 + $0x1b8] sm:$0xff] }
 0x55e   :  { %624 = vrcp.f32 %v343_v33  ;;  %v355_v39 = vand.u32 2147483648, %v343_v33  ;;  %vm349_vm10 = vweird.f32 %v343_v33  ;;  %v353_v40 = vand.u32 2147483647, %v343_v33 }
 0x560   :  { %v356_v42 = vor.u32 1.1754944e-38, %v355_v39  ;;  %vm354_vm12 = vcmp.eq.f32.partialorder %v353_v40, 8.507059e+37 }
 0x564   :  { %v625_v34 = vpop.eup %624 }
 0x565   :  { %v345_v35 = vmul.f32 %v625_v34, %v343_v33  ;;  %vm350_vm9 = vweird.f32 %v625_v34  ;;  %v484_v33 = vld [vmem:[#allocation8 + $0x1b0] sm:$0xff] }
 0x566   :  { %vm351_vm11 = vmor %vm349_vm10, %vm350_vm9 }
 0x567   :  { %v346_v36 = vsub.f32 1.0, %v345_v35  ;;  %v482_v35 = vld [vmem:[#allocation8 + $0x1a0] sm:$0xff] }
 0x569   :  { %v347_v37 = vmul.f32 %v625_v34, %v346_v36 }
 0x56b   :  { %v348_v38 = vadd.f32 %v625_v34, %v347_v37 }
 0x56d   :  { %v352_v41 = vsel %vm351_vm11, %v625_v34, %v348_v38  ;;  %v483_v34 = vld [vmem:[#allocation8 + $0x1a8] sm:$0xff]  ;;  %v481_v38 = vld [vmem:[#allocation8 + $0x198] sm:$0xff] }
 0x56e   :  { %v357_v44 = vsel %vm354_vm12, %v356_v42, %v352_v41  ;;  %v615_v42 = vld [vmem:[#allocation10 + $0x6] ss:$0 sm:$0xff] }
 0x5c5   :  { %v361_v43 = vpop.permute.xlu0 %360 }
 0x5c6   :  { %v363_v45 = vmul.f32 %v361_v43, %v357_v44 }
 0x5c8   :  { %365 = vrot.lane.b32.xlu1 %v363_v45, %s802_s4 }
 0x63a   :  { %v366_v46 = vpop.permute.xlu1 %365 }
 0x63b   :  { %v368_v47 = vadd.f32 %v366_v46, %v338_v30  ;;  %v487_v30 = vld [vmem:[#allocation8 + $0x1c8] sm:$0xff] }
 0x63c   :  { %503 = vmatpush.msrb.mxu0 %v487_v30 }
 0x63d   :  { %626 = vtanh.f32 %v368_v47 }
 0x63e   :  { %504 = vmatpush.msrb.mxu0 %v486_v31 }
 0x640   :  { %505 = vmatpush.msrb.mxu0 %v485_v32 }
 0x642   :  { %506 = vmatpush.msrb.mxu0 %v484_v33 }
 0x643   :  { %v627_v48 = vpop.eup %626 }
 0x644   :  { %371 = vrot.lane.b32.xlu2 %v627_v48, %s802_s4  ;;  %507 = vmatpush.msrb.mxu0 %v483_v34 }
 0x646   :  { %508 = vmatpush.msrb.mxu0 %v482_v35 }
 0x648   :  { %509 = vmatpush.msrb.mxu0 %v481_v38 }
 0x69e   :  { %v372_v49 = vpop.permute.xlu2 %371 }
 0x69f   :  { %v374_v50 = vsub.f32 %v203_v14, %v372_v49 }
 0x6a1   :  { %376 = vrot.lane.b32.xlu0 %v374_v50, %s798_s13 }
 0x6a9   :  { %390 = vrot.lane.b32.xlu0 %v874_v51, %s798_s13 }
 0x713   :  { %v377_v52 = vpop.permute.xlu0 %376 }
 0x714   :  { %v379_v53 = vmul.f32 %v377_v52, %v357_v44 }
 0x716   :  { %381 = vrot.lane.b32.xlu1 %v379_v53, %s798_s13 }
 0x71b   :  { %v391_v0 = vpop.permute.xlu0 %390 }
 0x788   :  { %v382_v61 = vpop.permute.xlu1 %381 }
 0x789   :  { %v384_v62 = vadd.f32 %v627_v48, %v382_v61 }
 0x78b   :  { %386 = vrot.lane.b32.xlu2 %v384_v62, %s802_s4 }
 0x7e5   :  { %v387_v1 = vpop.permute.xlu2 %386 }
 0x7e6   :  { %560 = vst.msk [vmem:[#allocation11] sm:$0x3] %vm559_vm13, %v387_v1  ;;  %v393_v2 = vsel %vm176_vm1, %v387_v1, %v391_v0 }
 0x7e7   :  { %592 = vmatmul.msk.f32.vlgmr.msrb.gmra.mxu3 %vm106_vm0, %v393_v2 }
 0x86a   :  { %v424_v4 = vpop.f32.mrf.mxu3 }
 0x86b   :  { %v425_v5 = vadd.f32 %v614_v3, %v424_v4 }
 0x86d   :  { %447 = vrot.lane.b32.xlu1 %v425_v5, %s798_s13  ;;  %v593_v6 = vmul.f32 -1.442695, %v425_v5 }
 0x86f   :  { %628 = vpow2.f32 %v593_v6 }
 0x875   :  { %v629_v7 = vpop.eup %628 }
 0x876   :  { %v430_v8 = vadd.f32 1.0, %v629_v7 }
 0x878   :  { %630 = vrcp.f32 %v430_v8  ;;  %v442_v14 = vand.u32 2147483648, %v430_v8  ;;  %vm436_vm15 = vweird.f32 %v430_v8  ;;  %v440_v15 = vand.u32 2147483647, %v430_v8 }
 0x87a   :  { %v443_v17 = vor.u32 1.1754944e-38, %v442_v14  ;;  %vm441_vm3 = vcmp.eq.f32.partialorder %v440_v15, 8.507059e+37 }
 0x87e   :  { %v631_v9 = vpop.eup %630 }
 0x87f   :  { %v432_v10 = vmul.f32 %v631_v9, %v430_v8  ;;  %vm437_vm14 = vweird.f32 %v631_v9 }
 0x880   :  { %vm438_vm2 = vmor %vm436_vm15, %vm437_vm14 }
 0x881   :  { %v433_v11 = vsub.f32 1.0, %v432_v10 }
 0x883   :  { %v434_v12 = vmul.f32 %v631_v9, %v433_v11 }
 0x885   :  { %v435_v13 = vadd.f32 %v631_v9, %v434_v12 }
 0x887   :  { %v439_v16 = vsel %vm438_vm2, %v631_v9, %v435_v13 }
 0x888   :  { %v444_v19 = vsel %vm441_vm3, %v443_v17, %v439_v16 }
 0x8df   :  { %v448_v18 = vpop.permute.xlu1 %447 }
 0x8e0   :  { %v450_v20 = vmul.f32 %v448_v18, %v444_v19 }
 0x8e2   :  { %452 = vrot.lane.b32.xlu2 %v450_v20, %s802_s4 }
 0x93c   :  { %v453_v21 = vpop.permute.xlu2 %452 }
 0x93d   :  { %v455_v22 = vadd.f32 %v453_v21, %v425_v5 }
 0x93f   :  { %632 = vtanh.f32 %v455_v22 }
 0x945   :  { %v633_v23 = vpop.eup %632 }
 0x946   :  { %458 = vrot.lane.b32.xlu0 %v633_v23, %s802_s4 }
 0x9b8   :  { %v459_v24 = vpop.permute.xlu0 %458 }
 0x9b9   :  { %v461_v25 = vsub.f32 %v874_v51, %v459_v24 }
 0x9bb   :  { %463 = vrot.lane.b32.xlu1 %v461_v25, %s798_s13 }
 0x9c3   :  { %477 = vrot.lane.b32.xlu1 %v207_v28, %s798_s13 }
 0xa2d   :  { %v464_v26 = vpop.permute.xlu1 %463 }
 0xa2e   :  { %v466_v27 = vmul.f32 %v464_v26, %v444_v19 }
 0xa30   :  { %468 = vrot.lane.b32.xlu2 %v466_v27, %s798_s13 }
 0xa35   :  { %v478_v39 = vpop.permute.xlu1 %477 }
 0xa8a   :  { %v469_v36 = vpop.permute.xlu2 %468 }
 0xa8b   :  { %v471_v37 = vadd.f32 %v633_v23, %v469_v36 }
 0xa8d   :  { %473 = vrot.lane.b32.xlu0 %v471_v37, %s802_s4 }
 0xaff   :  { %v474_v40 = vpop.permute.xlu0 %473 }
 0xb00   :  { %v480_v41 = vsel %vm176_vm1, %v474_v40, %v478_v39 }
 0xb01   :  { %594 = vmatmul.msk.f32.vlgmr.msrb.gmra.mxu0 %vm106_vm0, %v480_v41 }
 0xb7e   :  { %v511_v43 = vpop.f32.mrf.mxu0 }
 0xb7f   :  { %v512_v44 = vadd.f32 %v615_v42, %v511_v43 }
 0xb81   :  { %534 = vrot.lane.b32.xlu2 %v512_v44, %s798_s13  ;;  %v595_v45 = vmul.f32 -1.442695, %v512_v44 }
 0xb83   :  { %634 = vpow2.f32 %v595_v45 }
 0xb89   :  { %v635_v46 = vpop.eup %634 }
 0xb8a   :  { %v517_v47 = vadd.f32 1.0, %v635_v46 }
 0xb8c   :  { %636 = vrcp.f32 %v517_v47  ;;  %v529_v53 = vand.u32 2147483648, %v517_v47  ;;  %vm523_vm1 = vweird.f32 %v517_v47  ;;  %v527_v54 = vand.u32 2147483647, %v517_v47 }
 0xb8e   :  { %v530_v56 = vor.u32 1.1754944e-38, %v529_v53  ;;  %vm528_vm5 = vcmp.eq.f32.partialorder %v527_v54, 8.507059e+37 }
 0xb92   :  { %v637_v48 = vpop.eup %636 }
 0xb93   :  { %v519_v49 = vmul.f32 %v637_v48, %v517_v47  ;;  %vm524_vm4 = vweird.f32 %v637_v48 }
 0xb94   :  { %vm525_vm0 = vmor %vm523_vm1, %vm524_vm4 }
 0xb95   :  { %v520_v50 = vsub.f32 1.0, %v519_v49 }
 0xb97   :  { %v521_v51 = vmul.f32 %v637_v48, %v520_v50 }
 0xb99   :  { %v522_v52 = vadd.f32 %v637_v48, %v521_v51 }
 0xb9b   :  { %v526_v55 = vsel %vm525_vm0, %v637_v48, %v522_v52 }
 0xb9c   :  { %v531_v58 = vsel %vm528_vm5, %v530_v56, %v526_v55 }
 0xbdb   :  { %v535_v57 = vpop.permute.xlu2 %534 }
 0xbdc   :  { %v537_v59 = vmul.f32 %v535_v57, %v531_v58 }
 0xbde   :  { %539 = vrot.lane.b32.xlu0 %v537_v59, %s802_s4 }
 0xc50   :  { %v540_v60 = vpop.permute.xlu0 %539 }
 0xc51   :  { %v542_v61 = vadd.f32 %v540_v60, %v512_v44 }
 0xc53   :  { %638 = vtanh.f32 %v542_v61 }
 0xc59   :  { %v639_v62 = vpop.eup %638 }
 0xc5a   :  { %545 = vrot.lane.b32.xlu1 %v639_v62, %s802_s4 }
 0xccc   :  { %v546_v63 = vpop.permute.xlu1 %545 }
 0xccd   :  { %v548_v0 = vsub.f32 %v207_v28, %v546_v63 }
 0xccf   :  { %550 = vrot.lane.b32.xlu2 %v548_v0, %s798_s13 }
 0xd29   :  { %v551_v1 = vpop.permute.xlu2 %550 }
 0xd2a   :  { %v553_v2 = vmul.f32 %v551_v1, %v531_v58 }
 0xd2c   :  { %555 = vrot.lane.b32.xlu0 %v553_v2, %s798_s13 }
 0xd9e   :  { %v556_v3 = vpop.permute.xlu0 %555 }
 0xd9f   :  { %v558_v4 = vadd.f32 %v639_v62, %v556_v3 }
 0xda1   :  { %562 = vrot.lane.b32.xlu1 %v558_v4, %s803_s19 }
 0xe13   :  { %v563_v5 = vpop.permute.xlu1 %562 }
 0xe14   :  { %566 = vst.msk [vmem:[#allocation11] sm:$0x3] %vm565_vm6, %v563_v5 }
 0xe15   :  { %577 = dma.vmem_to_hbm [thread:$0]  %s573_s21, 32, %s575_s24, [#allocation4]  }
 0xe16   :  { %790 = dma.done.wait [#allocation4], 32  }
 0xe17   :  { %791 = vsyncadd [#allocation4], 4294967264 }
 0xe18   :  { %582 = vsyncpa [#allocation3], 1 }
 0xe19   :  { %583 = vsyncpa [#allocation6], 1 }
 0xe1a   :  { %584 = vsyncpa [#allocation9], 1 }
 0xe1b   :  { %585 = vsyncpa [#allocation4], 1 }

</bundles_post_ra>
